<compile_context>
chip_gen: v5e
topology: v5e:2x2
jax: 0.10.0
libtpu: 0.0.40
codegen_flags: <defaults>
</compile_context>

<pallas_src>
import jax
import jax.numpy as jnp
from jax.experimental import pallas as pl
from jax.experimental.pallas import tpu as pltpu

BN_EPS = 1e-5       # nn.BatchNorm1d default eps
NORM_EPS = 1e-12    # F.normalize default eps


def arcface_kernel(x_ref, bbw_ref, bbb_ref,
                   g1_ref, be1_ref,
                   fcw_ref, fcb_ref,
                   g2_ref, be2_ref,
                   mw_ref, colinv_ref, out_ref):
    # ---- synthetic backbone: GAP over the lane-dense last axis, 1x1-conv proj.
    pooled = jnp.mean(x_ref[...], axis=-1)                       # (B, C)
    feat = jnp.dot(pooled, bbw_ref[...],
                   preferred_element_type=jnp.float32) + bbb_ref[...]   # (B, F)

    # ---- bn1: training mode (batch stats, biased variance), one-pass stats,
    #      gamma folded into a single per-feature scale.
    m1 = jnp.mean(feat, axis=0, keepdims=True)
    v1 = jnp.maximum(jnp.mean(feat * feat, axis=0, keepdims=True) - m1 * m1, 0.0)
    s1 = g1_ref[...] * jax.lax.rsqrt(v1 + BN_EPS)
    h = (feat - m1) * s1 + be1_ref[...]

    # ---- dropout: Config['drop_rate'] = 0.0 -> identity
    # TODO(synk): non-zero dropout would need pltpu.prng_seed / prng_random_bits.

    # ---- fc1: Linear(num_features -> embed_size), bf16 MXU operands, f32 acc.
    e = jnp.dot(h.astype(jnp.bfloat16), fcw_ref[...].astype(jnp.bfloat16),
                preferred_element_type=jnp.float32) + fcb_ref[...]      # (B, E)

    # ---- bn2: training mode.
    m2 = jnp.mean(e, axis=0, keepdims=True)
    v2 = jnp.maximum(jnp.mean(e * e, axis=0, keepdims=True) - m2 * m2, 0.0)
    s2 = g2_ref[...] * jax.lax.rsqrt(v2 + BN_EPS)
    e = (e - m2) * s2 + be2_ref[...]

    # ---- ArcFaceLayer (training branch): cosine logits via un-normalized
    #      matmul + post-scaling by row/column inverse norms.
    row_inv = jax.lax.rsqrt(
        jnp.maximum(jnp.sum(e * e, axis=1, keepdims=True), NORM_EPS * NORM_EPS))
    logits = jnp.dot(e.astype(jnp.bfloat16), mw_ref[...],
                     preferred_element_type=jnp.float32)                 # (B, TN)
    out_ref[...] = logits * row_inv * colinv_ref[...]


def arcface_forward(x_nchw, p, *, tn=128):
    # tn: class-tile width.  128 here (small demo); at real ArcFace sizes use a
    # multiple of 256 for v6e/v7x (128 for v5e), as large as VMEM allows
    # (<= ~4096 f32 / 8192 bf16 columns per buffer on v7x's 64 MiB VMEM).
    B, C, H, W = x_nchw.shape
    x = x_nchw.reshape(B, C, H * W)            # pure reshape of NCHW, no transpose
    F_ = p["bb_w"].shape[1]
    E, num_classes = p["margin_W"].shape

    # Hoisted out of the kernel: per-class inverse column norms (weights only).
    col_sq = jnp.sum(p["margin_W"] * p["margin_W"], axis=0, keepdims=True)
    col_inv = jax.lax.rsqrt(jnp.maximum(col_sq, NORM_EPS * NORM_EPS))   # (1, N)

    # Classifier weight streamed as bf16 (f32 accumulation inside the kernel).
    mw_bf16 = p["margin_W"].astype(jnp.bfloat16)

    # Pad class axis to a multiple of tn for clean, lane-dense tiles.
    n_pad = (-num_classes) % tn
    if n_pad:
        mw_bf16 = jnp.pad(mw_bf16, ((0, 0), (0, n_pad)))
        col_inv = jnp.pad(col_inv, ((0, 0), (0, n_pad)))
    n_padded = num_classes + n_pad
    grid = (n_padded // tn,)

    def const(shape):
        return pl.BlockSpec(shape, lambda j, s=shape: (0,) * len(s))

    in_specs = [
        const((B, C, H * W)),                       # x (resident across tiles)
        const((C, F_)), const((1, F_)),             # backbone proj
        const((1, F_)), const((1, F_)),             # bn1 gamma/beta
        const((F_, E)), const((1, E)),              # fc1
        const((1, E)), const((1, E)),               # bn2 gamma/beta
        pl.BlockSpec((E, tn), lambda j: (0, j)),    # margin_W tile (bf16)
        pl.BlockSpec((1, tn), lambda j: (0, j)),    # col_inv tile
    ]

    out = pl.pallas_call(
        arcface_kernel,
        out_shape=jax.ShapeDtypeStruct((B, n_padded), jnp.float32),
        grid=grid,
        in_specs=in_specs,
        out_specs=pl.BlockSpec((B, tn), lambda j: (0, j)),
        compiler_params=pltpu.CompilerParams(
            dimension_semantics=("parallel",),       # shards class tiles on v7x
            vmem_limit_bytes=32 * 1024 * 1024),
    )(x, p["bb_w"], p["bb_b"][None, :],
      p["gamma1"][None, :], p["beta1"][None, :],
      p["fc1_w"], p["fc1_b"][None, :],
      p["gamma2"][None, :], p["beta2"][None, :],
      mw_bf16, col_inv)
    return out[:, :num_classes]


def arcface_ref(x_nchw, p):
    """Pure-JAX f32 reference mirroring the PyTorch forward (training branch)."""
    B, C, H, W = x_nchw.shape
    pooled = jnp.mean(x_nchw.reshape(B, C, H * W), axis=-1)
    feat = pooled @ p["bb_w"] + p["bb_b"]
    m1 = feat.mean(0)
    v1 = ((feat - m1) ** 2).mean(0)
    h = (feat - m1) / jnp.sqrt(v1 + BN_EPS) * p["gamma1"] + p["beta1"]
    e = h @ p["fc1_w"] + p["fc1_b"]
    m2 = e.mean(0)
    v2 = ((e - m2) ** 2).mean(0)
    e = (e - m2) / jnp.sqrt(v2 + BN_EPS) * p["gamma2"] + p["beta2"]
    xn = e / jnp.maximum(jnp.linalg.norm(e, axis=1, keepdims=True), NORM_EPS)
    wn = p["margin_W"] / jnp.maximum(
        jnp.linalg.norm(p["margin_W"], axis=0, keepdims=True), NORM_EPS)
    return xn @ wn


def init_params(key, C, num_features, embed_size, num_classes):
    ks = jax.random.split(key, 9)
    xavier_std = (2.0 / (embed_size + num_classes)) ** 0.5   # nn.init.xavier_normal_
    lin_bound = 1.0 / (num_features ** 0.5)                  # nn.Linear default init
    return {
        "bb_w": jax.random.normal(ks[0], (C, num_features), jnp.float32) / (C ** 0.5),
        "bb_b": 0.1 * jax.random.normal(ks[1], (num_features,), jnp.float32),
        "gamma1": 1.0 + 0.1 * jax.random.normal(ks[2], (num_features,), jnp.float32),
        "beta1": 0.1 * jax.random.normal(ks[3], (num_features,), jnp.float32),
        "fc1_w": jax.random.uniform(ks[4], (num_features, embed_size), jnp.float32,
                                    -lin_bound, lin_bound),
        "fc1_b": jax.random.uniform(ks[5], (embed_size,), jnp.float32,
                                    -lin_bound, lin_bound),
        "gamma2": 1.0 + 0.1 * jax.random.normal(ks[6], (embed_size,), jnp.float32),
        "beta2": 0.1 * jax.random.normal(ks[7], (embed_size,), jnp.float32),
        "margin_W": xavier_std * jax.random.normal(ks[8], (embed_size, num_classes),
                                                   jnp.float32),
    }


if __name__ == "__main__":
    B, C, H, W = 8, 4, 16, 16
    NUM_FEATURES, EMBED_SIZE, NUM_CLASSES = 32, 32, 256   # 256 classes -> 2 class tiles

    key = jax.random.PRNGKey(0)
    kx, kp = jax.random.split(key)
    x = jax.random.normal(kx, (B, C, H, W), jnp.float32)          # NCHW like PyTorch
    params = init_params(kp, C, NUM_FEATURES, EMBED_SIZE, NUM_CLASSES)

    out = arcface_forward(x, params)
    out = jax.block_until_ready(out)

    ref = arcface_ref(x, params)
    assert out.shape == (B, NUM_CLASSES), out.shape
    assert jnp.all(jnp.isfinite(out))
    assert jnp.allclose(out, ref, rtol=2e-2, atol=2e-2), float(jnp.abs(out - ref).max())

    print("KERNEL_OK")
</pallas_src>

<mosaic_0001>
module attributes {stable_mosaic.version = 11 : i64} {
  func.func @arcface_kernel(%arg0: i32, %arg1: memref<8x4x256xf32, #tpu.memory_space<vmem>>, %arg2: memref<4x32xf32, #tpu.memory_space<vmem>>, %arg3: memref<1x32xf32, #tpu.memory_space<vmem>>, %arg4: memref<1x32xf32, #tpu.memory_space<vmem>>, %arg5: memref<1x32xf32, #tpu.memory_space<vmem>>, %arg6: memref<32x32xf32, #tpu.memory_space<vmem>>, %arg7: memref<1x32xf32, #tpu.memory_space<vmem>>, %arg8: memref<1x32xf32, #tpu.memory_space<vmem>>, %arg9: memref<1x32xf32, #tpu.memory_space<vmem>>, %arg10: memref<32x128xbf16, #tpu.memory_space<vmem>>, %arg11: memref<1x128xf32, #tpu.memory_space<vmem>>, %arg12: memref<8x128xf32, #tpu.memory_space<vmem>>) attributes {dimension_semantics = [#tpu.dimension_semantics<parallel>], iteration_bounds = array<i64: 2>, scalar_prefetch = 0 : i64, scratch_operands = 0 : i64, tpu.core_type = #tpu.core_type<tc>, window_params = [{pipeline_mode = #tpu.pipeline_mode<synchronous>, transform_indices = @transform_0, window_bounds = array<i64: 8, 4, 256>}, {pipeline_mode = #tpu.pipeline_mode<synchronous>, transform_indices = @transform_1, window_bounds = array<i64: 4, 32>}, {pipeline_mode = #tpu.pipeline_mode<synchronous>, transform_indices = @transform_2, window_bounds = array<i64: 1, 32>}, {pipeline_mode = #tpu.pipeline_mode<synchronous>, transform_indices = @transform_3, window_bounds = array<i64: 1, 32>}, {pipeline_mode = #tpu.pipeline_mode<synchronous>, transform_indices = @transform_4, window_bounds = array<i64: 1, 32>}, {pipeline_mode = #tpu.pipeline_mode<synchronous>, transform_indices = @transform_5, window_bounds = array<i64: 32, 32>}, {pipeline_mode = #tpu.pipeline_mode<synchronous>, transform_indices = @transform_6, window_bounds = array<i64: 1, 32>}, {pipeline_mode = #tpu.pipeline_mode<synchronous>, transform_indices = @transform_7, window_bounds = array<i64: 1, 32>}, {pipeline_mode = #tpu.pipeline_mode<synchronous>, transform_indices = @transform_8, window_bounds = array<i64: 1, 32>}, {transform_indices = @transform_9, window_bounds = array<i64: 32, 128>}, {transform_indices = @transform_10, window_bounds = array<i64: 1, 128>}, {transform_indices = @transform_11, window_bounds = array<i64: 8, 128>}]} {
    %c0 = arith.constant 0 : index
    %c0_0 = arith.constant 0 : index
    %c0_1 = arith.constant 0 : index
    %0 = vector.load %arg1[%c0, %c0_0, %c0_1] : memref<8x4x256xf32, #tpu.memory_space<vmem>>, vector<8x4x256xf32>
    %cst = arith.constant dense<0.000000e+00> : vector<8x4xf32>
    %1 = vector.multi_reduction <add>, %0, %cst [2] : vector<8x4x256xf32> to vector<8x4xf32>
    %cst_2 = arith.constant 2.560000e+02 : f32
    %2 = vector.broadcast %cst_2 : f32 to vector<8x4xf32>
    %3 = arith.divf %1, %2 : vector<8x4xf32>
    %c0_3 = arith.constant 0 : index
    %c0_4 = arith.constant 0 : index
    %4 = vector.load %arg2[%c0_3, %c0_4] : memref<4x32xf32, #tpu.memory_space<vmem>>, vector<4x32xf32>
    %cst_5 = arith.constant dense<0.000000e+00> : vector<8x32xf32>
    %5 = tpu.matmul %3, %4, %cst_5 {dimension_numbers = #tpu.dot_dimension_numbers<[1], [0], [0], [1], [0, 0, 1, 1], [], []>} : vector<8x4xf32>, vector<4x32xf32>, vector<8x32xf32> -> vector<8x32xf32>
    %c0_6 = arith.constant 0 : index
    %c0_7 = arith.constant 0 : index
    %6 = vector.load %arg3[%c0_6, %c0_7] : memref<1x32xf32, #tpu.memory_space<vmem>>, vector<1x32xf32>
    %7 = vector.broadcast %6 : vector<1x32xf32> to vector<8x32xf32>
    %8 = arith.addf %5, %7 : vector<8x32xf32>
    %cst_8 = arith.constant dense<0.000000e+00> : vector<32xf32>
    %9 = vector.multi_reduction <add>, %8, %cst_8 [0] : vector<8x32xf32> to vector<32xf32>
    %10 = vector.shape_cast %9 : vector<32xf32> to vector<1x32xf32>
    %cst_9 = arith.constant 8.000000e+00 : f32
    %11 = vector.broadcast %cst_9 : f32 to vector<1x32xf32>
    %12 = arith.divf %10, %11 : vector<1x32xf32>
    %13 = arith.mulf %8, %8 : vector<8x32xf32>
    %cst_10 = arith.constant dense<0.000000e+00> : vector<32xf32>
    %14 = vector.multi_reduction <add>, %13, %cst_10 [0] : vector<8x32xf32> to vector<32xf32>
    %15 = vector.shape_cast %14 : vector<32xf32> to vector<1x32xf32>
    %cst_11 = arith.constant 8.000000e+00 : f32
    %16 = vector.broadcast %cst_11 : f32 to vector<1x32xf32>
    %17 = arith.divf %15, %16 : vector<1x32xf32>
    %18 = arith.mulf %12, %12 : vector<1x32xf32>
    %19 = arith.subf %17, %18 : vector<1x32xf32>
    %cst_12 = arith.constant 0.000000e+00 : f32
    %20 = vector.broadcast %cst_12 : f32 to vector<1x32xf32>
    %21 = arith.maximumf %19, %20 : vector<1x32xf32>
    %c0_13 = arith.constant 0 : index
    %c0_14 = arith.constant 0 : index
    %22 = vector.load %arg4[%c0_13, %c0_14] : memref<1x32xf32, #tpu.memory_space<vmem>>, vector<1x32xf32>
    %cst_15 = arith.constant 9.99999974E-6 : f32
    %23 = vector.broadcast %cst_15 : f32 to vector<1x32xf32>
    %24 = arith.addf %21, %23 : vector<1x32xf32>
    %25 = math.rsqrt %24 : vector<1x32xf32>
    %26 = arith.mulf %22, %25 : vector<1x32xf32>
    %27 = vector.broadcast %12 : vector<1x32xf32> to vector<8x32xf32>
    %28 = arith.subf %8, %27 : vector<8x32xf32>
    %29 = vector.broadcast %26 : vector<1x32xf32> to vector<8x32xf32>
    %30 = arith.mulf %28, %29 : vector<8x32xf32>
    %c0_16 = arith.constant 0 : index
    %c0_17 = arith.constant 0 : index
    %31 = vector.load %arg5[%c0_16, %c0_17] : memref<1x32xf32, #tpu.memory_space<vmem>>, vector<1x32xf32>
    %32 = vector.broadcast %31 : vector<1x32xf32> to vector<8x32xf32>
    %33 = arith.addf %30, %32 : vector<8x32xf32>
    %34 = arith.truncf %33 : vector<8x32xf32> to vector<8x32xbf16>
    %c0_18 = arith.constant 0 : index
    %c0_19 = arith.constant 0 : index
    %35 = vector.load %arg6[%c0_18, %c0_19] : memref<32x32xf32, #tpu.memory_space<vmem>>, vector<32x32xf32>
    %36 = arith.truncf %35 : vector<32x32xf32> to vector<32x32xbf16>
    %cst_20 = arith.constant dense<0.000000e+00> : vector<8x32xf32>
    %37 = tpu.matmul %34, %36, %cst_20 {dimension_numbers = #tpu.dot_dimension_numbers<[1], [0], [0], [1], [0, 0, 1, 1], [], []>} : vector<8x32xbf16>, vector<32x32xbf16>, vector<8x32xf32> -> vector<8x32xf32>
    %c0_21 = arith.constant 0 : index
    %c0_22 = arith.constant 0 : index
    %38 = vector.load %arg7[%c0_21, %c0_22] : memref<1x32xf32, #tpu.memory_space<vmem>>, vector<1x32xf32>
    %39 = vector.broadcast %38 : vector<1x32xf32> to vector<8x32xf32>
    %40 = arith.addf %37, %39 : vector<8x32xf32>
    %cst_23 = arith.constant dense<0.000000e+00> : vector<32xf32>
    %41 = vector.multi_reduction <add>, %40, %cst_23 [0] : vector<8x32xf32> to vector<32xf32>
    %42 = vector.shape_cast %41 : vector<32xf32> to vector<1x32xf32>
    %cst_24 = arith.constant 8.000000e+00 : f32
    %43 = vector.broadcast %cst_24 : f32 to vector<1x32xf32>
    %44 = arith.divf %42, %43 : vector<1x32xf32>
    %45 = arith.mulf %40, %40 : vector<8x32xf32>
    %cst_25 = arith.constant dense<0.000000e+00> : vector<32xf32>
    %46 = vector.multi_reduction <add>, %45, %cst_25 [0] : vector<8x32xf32> to vector<32xf32>
    %47 = vector.shape_cast %46 : vector<32xf32> to vector<1x32xf32>
    %cst_26 = arith.constant 8.000000e+00 : f32
    %48 = vector.broadcast %cst_26 : f32 to vector<1x32xf32>
    %49 = arith.divf %47, %48 : vector<1x32xf32>
    %50 = arith.mulf %44, %44 : vector<1x32xf32>
    %51 = arith.subf %49, %50 : vector<1x32xf32>
    %cst_27 = arith.constant 0.000000e+00 : f32
    %52 = vector.broadcast %cst_27 : f32 to vector<1x32xf32>
    %53 = arith.maximumf %51, %52 : vector<1x32xf32>
    %c0_28 = arith.constant 0 : index
    %c0_29 = arith.constant 0 : index
    %54 = vector.load %arg8[%c0_28, %c0_29] : memref<1x32xf32, #tpu.memory_space<vmem>>, vector<1x32xf32>
    %cst_30 = arith.constant 9.99999974E-6 : f32
    %55 = vector.broadcast %cst_30 : f32 to vector<1x32xf32>
    %56 = arith.addf %53, %55 : vector<1x32xf32>
    %57 = math.rsqrt %56 : vector<1x32xf32>
    %58 = arith.mulf %54, %57 : vector<1x32xf32>
    %59 = vector.broadcast %44 : vector<1x32xf32> to vector<8x32xf32>
    %60 = arith.subf %40, %59 : vector<8x32xf32>
    %61 = vector.broadcast %58 : vector<1x32xf32> to vector<8x32xf32>
    %62 = arith.mulf %60, %61 : vector<8x32xf32>
    %c0_31 = arith.constant 0 : index
    %c0_32 = arith.constant 0 : index
    %63 = vector.load %arg9[%c0_31, %c0_32] : memref<1x32xf32, #tpu.memory_space<vmem>>, vector<1x32xf32>
    %64 = vector.broadcast %63 : vector<1x32xf32> to vector<8x32xf32>
    %65 = arith.addf %62, %64 : vector<8x32xf32>
    %66 = arith.mulf %65, %65 : vector<8x32xf32>
    %cst_33 = arith.constant dense<0.000000e+00> : vector<8xf32>
    %67 = vector.multi_reduction <add>, %66, %cst_33 [1] : vector<8x32xf32> to vector<8xf32>
    %68 = vector.shape_cast %67 : vector<8xf32> to vector<8x1xf32>
    %cst_34 = arith.constant 1.000000e-24 : f32
    %69 = vector.broadcast %cst_34 : f32 to vector<8x1xf32>
    %70 = arith.maximumf %68, %69 : vector<8x1xf32>
    %71 = math.rsqrt %70 : vector<8x1xf32>
    %72 = arith.truncf %65 : vector<8x32xf32> to vector<8x32xbf16>
    %c0_35 = arith.constant 0 : index
    %c0_36 = arith.constant 0 : index
    %73 = vector.load %arg10[%c0_35, %c0_36] : memref<32x128xbf16, #tpu.memory_space<vmem>>, vector<32x128xbf16>
    %cst_37 = arith.constant dense<0.000000e+00> : vector<8x128xf32>
    %74 = tpu.matmul %72, %73, %cst_37 {dimension_numbers = #tpu.dot_dimension_numbers<[1], [0], [0], [1], [0, 0, 1, 1], [], []>} : vector<8x32xbf16>, vector<32x128xbf16>, vector<8x128xf32> -> vector<8x128xf32>
    %75 = vector.broadcast %71 : vector<8x1xf32> to vector<8x128xf32>
    %76 = arith.mulf %74, %75 : vector<8x128xf32>
    %c0_38 = arith.constant 0 : index
    %c0_39 = arith.constant 0 : index
    %77 = vector.load %arg11[%c0_38, %c0_39] : memref<1x128xf32, #tpu.memory_space<vmem>>, vector<1x128xf32>
    %78 = vector.broadcast %77 : vector<1x128xf32> to vector<8x128xf32>
    %79 = arith.mulf %76, %78 : vector<8x128xf32>
    %c0_40 = arith.constant 0 : index
    %c0_41 = arith.constant 0 : index
    %80 = vector.load %arg12[%c0_40, %c0_41] : memref<8x128xf32, #tpu.memory_space<vmem>>, vector<8x128xf32>
    tpu.vector_store %arg12[%c0_40, %c0_41], %79 {strides = array<i32>} : memref<8x128xf32, #tpu.memory_space<vmem>>, vector<8x128xf32>,
    return
  }
  func.func @transform_0(%arg0: i32) -> (i32, i32, i32) {
    %c0_i32 = arith.constant 0 : i32
    %c0_i32_0 = arith.constant 0 : i32
    %c0_i32_1 = arith.constant 0 : i32
    %c0_i32_2 = arith.constant 0 : i32
    return %c0_i32, %c0_i32_0, %c0_i32_1 : i32, i32, i32
  }
  func.func @transform_1(%arg0: i32) -> (i32, i32) {
    %c0_i32 = arith.constant 0 : i32
    %c0_i32_0 = arith.constant 0 : i32
    %c0_i32_1 = arith.constant 0 : i32
    return %c0_i32, %c0_i32_0 : i32, i32
  }
  func.func @transform_2(%arg0: i32) -> (i32, i32) {
    %c0_i32 = arith.constant 0 : i32
    %c0_i32_0 = arith.constant 0 : i32
    %c0_i32_1 = arith.constant 0 : i32
    return %c0_i32, %c0_i32_0 : i32, i32
  }
  func.func @transform_3(%arg0: i32) -> (i32, i32) {
    %c0_i32 = arith.constant 0 : i32
    %c0_i32_0 = arith.constant 0 : i32
    %c0_i32_1 = arith.constant 0 : i32
    return %c0_i32, %c0_i32_0 : i32, i32
  }
  func.func @transform_4(%arg0: i32) -> (i32, i32) {
    %c0_i32 = arith.constant 0 : i32
    %c0_i32_0 = arith.constant 0 : i32
    %c0_i32_1 = arith.constant 0 : i32
    return %c0_i32, %c0_i32_0 : i32, i32
  }
  func.func @transform_5(%arg0: i32) -> (i32, i32) {
    %c0_i32 = arith.constant 0 : i32
    %c0_i32_0 = arith.constant 0 : i32
    %c0_i32_1 = arith.constant 0 : i32
    return %c0_i32, %c0_i32_0 : i32, i32
  }
  func.func @transform_6(%arg0: i32) -> (i32, i32) {
    %c0_i32 = arith.constant 0 : i32
    %c0_i32_0 = arith.constant 0 : i32
    %c0_i32_1 = arith.constant 0 : i32
    return %c0_i32, %c0_i32_0 : i32, i32
  }
  func.func @transform_7(%arg0: i32) -> (i32, i32) {
    %c0_i32 = arith.constant 0 : i32
    %c0_i32_0 = arith.constant 0 : i32
    %c0_i32_1 = arith.constant 0 : i32
    return %c0_i32, %c0_i32_0 : i32, i32
  }
  func.func @transform_8(%arg0: i32) -> (i32, i32) {
    %c0_i32 = arith.constant 0 : i32
    %c0_i32_0 = arith.constant 0 : i32
    %c0_i32_1 = arith.constant 0 : i32
    return %c0_i32, %c0_i32_0 : i32, i32
  }
  func.func @transform_9(%arg0: i32) -> (i32, i32) {
    %c0_i32 = arith.constant 0 : i32
    %c0_i32_0 = arith.constant 0 : i32
    return %c0_i32, %arg0 : i32, i32
  }
  func.func @transform_10(%arg0: i32) -> (i32, i32) {
    %c0_i32 = arith.constant 0 : i32
    %c0_i32_0 = arith.constant 0 : i32
    return %c0_i32, %arg0 : i32, i32
  }
  func.func @transform_11(%arg0: i32) -> (i32, i32) {
    %c0_i32 = arith.constant 0 : i32
    %c0_i32_0 = arith.constant 0 : i32
    return %c0_i32, %arg0 : i32, i32
  }
}

</mosaic_0001>

<bundles_post_ra>
// kernel: tpu_custom_call.1
= control target key start
LH: loop header
LB: loop body
LE: loop exit
PB: predicated region body
PF: predicated region fallthrough
CT: control target
= control target key end

     0   :  { %s1707_s0 = inlined_call_operand.hbm [shape: f32[8,4,256], index: 0, kind: input, shape index: {}]   ;;  %s1708_s1 = inlined_call_operand.hbm [shape: f32[4,32], index: 1, kind: input, shape index: {}]   ;;  %s1709_s2 = inlined_call_operand.vmem [shape: f32[1,32], index: 2, kind: input, shape index: {}]   ;;  %s1710_s3 = inlined_call_operand.hbm [shape: f32[1,32], index: 3, kind: input, shape index: {}]   ;;  %s1711_s4 = inlined_call_operand.hbm [shape: f32[1,32], index: 4, kind: input, shape index: {}]   ;;  %s1712_s5 = inlined_call_operand.hbm [shape: f32[32,32], index: 5, kind: input, shape index: {}]   ;;  %s1713_s6 = inlined_call_operand.vmem [shape: f32[1,32], index: 6, kind: input, shape index: {}]   ;;  %s1714_s7 = inlined_call_operand.vmem [shape: f32[1,32], index: 7, kind: input, shape index: {}]   ;;  %s1715_s8 = inlined_call_operand.vmem [shape: f32[1,32], index: 8, kind: input, shape index: {}]   ;;  %s1716_s9 = inlined_call_operand.hbm [shape: bf16[32,256], index: 9, kind: input, shape index: {}]   ;;  %s1717_s10 = inlined_call_operand.vmem [shape: f32[1,256], index: 10, kind: input, shape index: {}]   ;;  %s1718_s11 = inlined_call_operand.hbm [shape: f32[8,256], index: 11, kind: output, shape index: {}]  }
   0x1   :  { %1721 = sst [smem:[#allocation20_spill]] %s1707_s0 }
   0x2   :  { %1722 = sst [smem:[#allocation21_spill]] %s1708_s1 }
   0x3   :  { %1723 = sst [smem:[#allocation22_spill]] %s1710_s3 }
   0x4   :  { %1724 = sst [smem:[#allocation23_spill]] %s1711_s4 }
   0x5   :  { %1725 = sst [smem:[#allocation24_spill]] %s1712_s5 }
   0x6   :  { %16 = vsyncpa [#allocation3], 0 }
   0x7   :  { %17 = vsyncpa [#allocation6], 0 }
   0x8   :  { %18 = vsyncpa [#allocation9], 0 }
   0x9   :  { %19 = vsyncpa [#allocation12], 0 }
   0xa   :  { %21 = vsyncpa [#allocation12 + $0x1], 0 }
   0xb   :  { %22 = vsyncpa [#allocation4], 0 }
   0xc   :  { %24 = vsyncpa [#allocation4 + $0x1], 0  ;;  %s1482_s17 = smov 0   ;;  %s1484_s18 = smov 0  }
   0xd   :  { %s1486_s19 = smov 0   ;;  %s1488_s20 = smov 0  }
   0xe LB: > { %s1503_s21 = sadd.s32 4294967295, %s1409_s20   ;;  %s997_s22 = sadd.s32 4294967294, %s1409_s20   ;;  %s1409_s20 = sphi %s1488_s20, %s1744_s20   ;;  %s1405_s19 = sphi %s1486_s19, %s1743_s19   ;;  %s1401_s18 = sphi %s1484_s18, %s1742_s18   ;;  %s1397_s17 = sphi %s1482_s17, %s1741_s17  }
   0xf   : > { %p239_p0 = scmp.ne.s32.totalorder %s1401_s18, %s1397_s17  ;;  %p240_p1 = scmp.eq.s32.totalorder %s1503_s21, 0 }
  0x10   : > { %p289_p2 = scmp.eq.s32.totalorder %s1503_s21, 1  ;;  %p295_p3 = scmp.eq.s32.totalorder %s997_s22, 1 }
  0x11   : > { %p1512_p4 = por %p240_p1, %p239_p0  ;;  %p998_p5 = scmp.ge.s32.totalorder %s1409_s20, 1 }
  0x12   : > { %p1517_p6 = por %p295_p3, %p239_p0  ;;  %p302_p7 = scmp.lt.s32.totalorder %s1409_s20, 3 }
  0x13   : > { %s1729_s1 = sld [smem:[#allocation21_spill]]  ;;  %s1411_s29 = smov [#allocation5]  }
  0x14   : > { %s1727_s24 = scalar_select %p1517_p6, 1, 0 }
  0x15   : > { %p1525_p8 = pnand %p998_p5, %p302_p7  ;;  %s330_s30 = sshll.u32 %s1411_s29, 4  ;;  %s331_s30 = int_to_ptr.vmem [resolvable:$true] %s330_s30 }
  0x16   : > { %1728 = sst [smem:[#allocation19_spill]] %s1727_s24  ;;  %s1412_s26 = smov [#allocation8]  }
  0x17   : > { %p1057_p10 = pneg %p1525_p8  ;;  %s1731_s4 = sld [smem:[#allocation23_spill]] }
  0x18   : > { %s1733_s0 = sld [smem:[#allocation20_spill]]  ;;  %s357_s29 = sshll.u32 %s1412_s26, 4  ;;  %s358_s29 = int_to_ptr.vmem [resolvable:$true] %s357_s29 }
  0x19   : > { %s328_s27 = sshll.u32 %s1729_s1, 4  ;;  %p1537_p11 = pnand %p1057_p10, %p240_p1  ;;  %s329_s27 = int_to_ptr.hbm [resolvable:$true] %s328_s27 }
  0x1a   : > { %s1413_s12 = smov [#allocation2]   ;;  %s1734_s3 = sld [smem:[#allocation22_spill]] }
  0x1b   : > { %1063 = dma.hbm_to_vmem [thread:$0]  (!%p1537_p11), %s329_s27, 64, %s331_s30, [#allocation6]  }
  0x1c   : > { %s315_s13 = sshll.u32 %s1413_s12, 4  ;;  %s1720_s16 = smov 128   ;;  %s316_s13 = int_to_ptr.vmem [resolvable:$true] %s315_s13 }
  0x1d   : > { %s355_s14 = sshll.u32 %s1731_s4, 4  ;;  %s1415_s22 = smov 8   ;;  %s356_s14 = int_to_ptr.hbm [resolvable:$true] %s355_s14 }
  0x1e   : > { %s313_s25 = sshll.u32 %s1733_s0, 4  ;;  %s1416_s27 = smov [#allocation7]   ;;  %s314_s25 = int_to_ptr.hbm [resolvable:$true] %s313_s25 }
  0x1f   : > { %1069 = dma.hbm_to_vmem [thread:$0]  (!%p1537_p11), %s356_s14, 16, %s358_s29, [#allocation9]  }
  0x20   : > { %s343_s24 = sshll.u32 %s1734_s3, 4  ;;  %s345_s30 = sshll.u32 %s1416_s27, 4  ;;  %s344_s24 = int_to_ptr.hbm [resolvable:$true] %s343_s24  ;;  %s346_s30 = int_to_ptr.vmem [resolvable:$true] %s345_s30 }
  0x21   : > { %1060 = dma.hbm_to_vmem [thread:$0]  (!%p1537_p11), %s314_s25, 1024, %s316_s13, [#allocation3], %s1720_s16, %s1720_s16, %s1415_s22  }
  0x22   : > { %s1735_s5 = sld [smem:[#allocation24_spill]]  ;;  %s1417_s4 = smov [#allocation10]  }
  0x23   : > { %1066 = dma.hbm_to_vmem [thread:$0]  (!%p1537_p11), %s344_s24, 16, %s346_s30, [#allocation6]  }
  0x24   : > { %s368_s25 = sshll.u32 %s1417_s4, 4  ;;  %s1561_s29 = sadd.s32 1, %s1409_s20   ;;  %s369_s25 = int_to_ptr.vmem [resolvable:$true] %s368_s25 }
  0x25   : > { %s223_s12 = ssub.s32 %s1409_s20, %s1561_s29  ;;  %s226_s13 = sadd.s32 1, %s1405_s19 }
  0x26   : > { %p224_p12 = scmp.eq.s32.totalorder %s223_s12, 0  ;;  %p233_p13 = scmp.ne.s32.totalorder %s1405_s19, %s1401_s18 }
  0x27   : > { %p234_p0 = scmp.eq.s32.totalorder %s1409_s20, 0  ;;  %p1086_p3 = scmp.lt.s32.totalorder %s1409_s20, 2 }
  0x28   : > { %s366_s1 = sshll.u32 %s1735_s5, 4  ;;  %p1579_p7 = por %p289_p2, %p233_p13  ;;  %s367_s1 = int_to_ptr.hbm [resolvable:$true] %s366_s1 }
  0x29   : > { %1072 = dma.hbm_to_vmem [thread:$0]  (!%p1537_p11), %s367_s1, 512, %s369_s25, [#allocation9], %s1720_s16, %s1720_s16, %s1415_s22  }
  0x2a   : > { %s1575_s27 = scalar_select %p224_p12, %s1405_s19, %s226_s13  }
  0x2b   : > { %p235_p5 = por %p234_p0, %p233_p13  ;;  %s391_s15 = sand.u32 1, %s1405_s19  }
  0x2c   : > { %s1006_s30 = sshll.u32 %s1409_s20, 2  ;;  %s1005_s14 = sshll.u32 %s391_s15, 4 }
  0x2d   : > { %s399_s1 = scalar_lea.hbm %s1716_s9, %s1006_s30  ;;  %s395_s25 = scalar_lea.vmem [#allocation11], %s1005_s14 }
  0x2e   : > { %s400_s4 = sshll.u32 %s399_s1, 4  ;;  %s402_s12 = sshll.u32 %s395_s25, 4  ;;  %s401_s4 = int_to_ptr.hbm [resolvable:$true] %s400_s4  ;;  %s403_s12 = int_to_ptr.vmem [resolvable:$true] %s402_s12 }
  0x2f   : > { %p1590_p10 = pnand %p1086_p3, %p235_p5  ;;  %s392_s16 = scalar_lea.sflag [#allocation12], %s391_s15 }
  0x30   : > { %s1301_s0 = sshra.s32 %s401_s4, 4  ;;  %s1308_s26 = scalar_lea.hbm %s1716_s9, 32  ;;  %s1302_s0 = int_to_ptr.hbm [resolvable:$true] %s1301_s0 }
  0x31   : > { %s1303_s3 = scalar_lea.hbm %s1302_s0, 16  ;;  %p1305_p11 = pneg %p1590_p10 }
  0x32   : > { %p1304_p2 = scmp.ne.s32.totalorder %s1302_s0, %s1303_s3  ;;  %p1309_p0 = scmp.lt.s32.totalorder %s1302_s0, %s1716_s9 }
  0x33   : > { %p1310_p3 = scmp.lt.s32.totalorder %s1308_s26, %s1303_s3 }
  0x34   : > { %p1306_p12 = pnand %p1305_p11, %p1304_p2 }
  0x35   : > { %p1311_p5 = por %p1310_p3, %p1309_p0 }
  0x36   : > { %p1307_p13 = pneg %p1306_p12 }
  0x38   : > { %p1312_p9 = pnand %p1311_p5, %p1307_p13 }
  0x3a   : > { %1315 = shalt.err (!%p1312_p9)
}
  0x3b   : > { %s1418_s15 = smov 64   ;;  %s1419_s25 = smov 4  }
  0x3c   : > { %s1738_s5 = smov 128   ;;  %420 = sbr.rel (%p1525_p8) target bundleno = 727 (0x2d7), region = 64 }
  0x3d   : > { %1076 = dma.hbm_to_vmem [thread:$0]  (!%p1590_p10), %s401_s4, 256, %s403_s12, %s392_s16, %s1738_s5, %s1418_s15, %s1419_s25  }
  0x41   : > { %1376 = dma.done.wait (%p240_p1), [#allocation3], 1024  }
  0x42   : > { %1378 = vsyncadd (%p240_p1), [#allocation3], 4294966272 }
  0x43   : > { %1380 = dma.done.wait (%p240_p1), [#allocation6], 80  }
  0x44   : > { %1382 = vsyncadd (%p240_p1), [#allocation6], 4294967216 }
  0x45   : > { %1384 = dma.done.wait (%p240_p1), [#allocation9], 528  }
  0x46   : > { %1386 = vsyncadd (%p240_p1), [#allocation9], 4294966768  ;;  %s1620_s0 = sand.u32 1, %s1401_s18  }
  0x47   : > { %s1013_s3 = sshll.u32 %s1620_s0, 4  ;;  %s448_s5 = scalar_lea.sflag [#allocation12], %s1620_s0 }
  0x48   : > { %s1624_s28 = scalar_lea.vmem [#allocation11], %s1013_s3 }
  0x49   : > { %1388 = dma.done.wait (%p1512_p4), %s448_s5, 256  }
  0x4a   : > { %1390 = vsyncadd (%p1512_p4), %s448_s5, 4294967040  ;;  %v498_v0 = vld [vmem:[#allocation2] sm:$0xff]  ;;  %v500_v1 = vld [vmem:[#allocation2 + $0x10] sm:$0xff]  ;;  %vm557_vm0 = vcmask 1043456   ;;  %v1420_v48 = vmov 256.0   ;;  %v626_v57 = vlaneseq  ;;  %vm636_vm2 = vcmask 1041409  }
  0x4b   : > { %514 = vst [vmem:[#allocation1] ss:$2 sm:$0xff] %v498_v0  ;;  %v499_v2 = vld [vmem:[#allocation2 + $0x8] sm:$0xff]  ;;  %v501_v3 = vld [vmem:[#allocation2 + $0x18] sm:$0xff]  ;;  %v502_v4 = vld [vmem:[#allocation2 + $0x20] sm:$0xff]  ;;  %1141 = vrcp.f32 %v1420_v48  ;;  %vm638_vm3 = vcmask 1042434  }
  0x4c   : > { %522 = vst [vmem:[#allocation1 + $0x20] ss:$2 sm:$0xff] %v500_v1  ;;  %v504_v5 = vld [vmem:[#allocation2 + $0x30] sm:$0xff]  ;;  %v503_v10 = vld [vmem:[#allocation2 + $0x28] sm:$0xff]  ;;  %v505_v16 = vld [vmem:[#allocation2 + $0x38] sm:$0xff]  ;;  %v627_v59 = vand.u32 127, %v626_v57 }
  0x4d   : > { %518 = vst [vmem:[#allocation1 + $0x10] ss:$2 sm:$0xff] %v499_v2  ;;  %v613_v51 = vld [vmem:[#allocation5] sm:$0xf]  ;;  %vm640_vm4 = vcmask 1043459   ;;  %vm642_vm5 = vcmask 1044484  }
  0x4e   : > { %526 = vst [vmem:[#allocation1 + $0x30] ss:$2 sm:$0xff] %v501_v3  ;;  %1015 = vmatpush.msk.msra.mxu0 %vm557_vm0, %v613_v51  ;;  %vm644_vm6 = vcmask 1045509   ;;  %vm646_vm7 = vcmask 1046534   ;;  %vm648_vm8 = vcmask 1047559   ;;  %vm650_vm9 = vcmask 31744  }
  0x4f   : > { %vm676_vm10 = vcmask 261120   ;;  %p494_p1 = scmp.lt.s32.totalorder %s1503_s21, 1  ;;  %s1014_s3 = sshll.u32 %s1620_s0, 3 }
  0x50   : > { %s1028_s5 = sshll.u32 %s1503_s21, 3  ;;  %s493_s4 = scalar_lea.vmem [#allocation13], %s1014_s3 }
  0x51   : > { %v1142_v49 = vpop.eup %1141  ;;  %s495_s22 = scalar_select %p494_p1, %s1503_s21, 1 }
  0x52   : > { %v515_v6 = vld.sshfl [vmem:[#allocation1] sm:$0xff pattern:$0x75316420]  ;;  %v516_v7 = vld.sshfl [vmem:[#allocation1 + $0x8] sm:$0xff pattern:$0x75316420]  ;;  %vm603_vm1 = vweird.f32 %v1142_v49  ;;  %s863_s16 = scalar_lea.hbm %s1718_s11, %s1028_s5 }
  0x53   : > { %v558_v8 = vsel %vm557_vm0, %v515_v6, 0.0  ;;  %v559_v9 = vsel %vm557_vm0, %v516_v7, 0.0  ;;  %529 = vst [vmem:[#allocation1] ss:$2 sm:$0xff] %v502_v4  ;;  %v599_v50 = vmul.f32 256.0, %v1142_v49  ;;  %s496_s25 = scalar_lea.vmem %s1717_s10, %s495_s22  ;;  %s865_s12 = sshll.u32 %s493_s4, 4  ;;  %s866_s12 = int_to_ptr.vmem [resolvable:$true] %s865_s12 }
  0x54   : > { %v560_v11 = vadd.f32 %v559_v9, %v558_v8  ;;  %v523_v12 = vld.sshfl [vmem:[#allocation1 + $0x20] sm:$0xff pattern:$0x75316420]  ;;  %v524_v13 = vld.sshfl [vmem:[#allocation1 + $0x28] sm:$0xff pattern:$0x75316420] }
  0x55   : > { %v568_v14 = vsel %vm557_vm0, %v523_v12, 0.0  ;;  %v569_v15 = vsel %vm557_vm0, %v524_v13, 0.0  ;;  %535 = vst [vmem:[#allocation1 + $0x20] ss:$2 sm:$0xff] %v504_v5  ;;  %v600_v52 = vsub.f32 1.0, %v599_v50  ;;  %s867_s13 = sshll.u32 %s863_s16, 4  ;;  %s868_s13 = int_to_ptr.hbm [resolvable:$true] %s867_s13 }
  0x56   : > { %561 = vadd.xlane.f32.xlu0 %v560_v11  ;;  %v570_v17 = vadd.f32 %v569_v15, %v568_v14  ;;  %v519_v18 = vld.sshfl [vmem:[#allocation1 + $0x10] sm:$0xff pattern:$0x75316420]  ;;  %v520_v19 = vld.sshfl [vmem:[#allocation1 + $0x18] sm:$0xff pattern:$0x75316420] }
  0x57   : > { %532 = vst [vmem:[#allocation1 + $0x10] ss:$2 sm:$0xff] %v503_v10  ;;  %v563_v20 = vsel %vm557_vm0, %v519_v18, 0.0  ;;  %v564_v21 = vsel %vm557_vm0, %v520_v19, 0.0  ;;  %v601_v53 = vmul.f32 %v1142_v49, %v600_v52  ;;  %s853_s21 = scalar_lea.sflag [#allocation4], %s1620_s0  ;;  %s1345_s30 = sshra.s32 %s868_s13, 4  ;;  %s1346_s30 = int_to_ptr.hbm [resolvable:$true] %s1345_s30 }
  0x58   : > { %571 = vadd.xlane.f32.xlu1 %v570_v17  ;;  %v527_v22 = vld.sshfl [vmem:[#allocation1 + $0x30] sm:$0xff pattern:$0x75316420]  ;;  %v528_v23 = vld.sshfl [vmem:[#allocation1 + $0x38] sm:$0xff pattern:$0x75316420]  ;;  %v565_v26 = vadd.f32 %v564_v21, %v563_v20  ;;  %p1352_p10 = scmp.lt.s32.totalorder %s1346_s30, %s1718_s11 }
  0x59   : > { %538 = vst [vmem:[#allocation1 + $0x30] ss:$2 sm:$0xff] %v505_v16  ;;  %v573_v24 = vsel %vm557_vm0, %v527_v22, 0.0  ;;  %v574_v25 = vsel %vm557_vm0, %v528_v23, 0.0  ;;  %v602_v54 = vadd.f32 %v1142_v49, %v601_v53  ;;  %s1347_s14 = scalar_lea.hbm %s1346_s30, 8  ;;  %s1351_s1 = scalar_lea.hbm %s1718_s11, 16 }
  0x5a   : > { %v530_v27 = vld.sshfl [vmem:[#allocation1] sm:$0xff pattern:$0x75316420]  ;;  %v531_v28 = vld.sshfl [vmem:[#allocation1 + $0x8] sm:$0xff pattern:$0x75316420]  ;;  %v575_v32 = vadd.f32 %v574_v25, %v573_v24  ;;  %p1348_p4 = scmp.ne.s32.totalorder %s1346_s30, %s1347_s14  ;;  %p1353_p2 = scmp.lt.s32.totalorder %s1351_s1, %s1347_s14 }
  0x5b   : > { %v578_v29 = vsel %vm557_vm0, %v530_v27, 0.0  ;;  %v579_v30 = vsel %vm557_vm0, %v531_v28, 0.0  ;;  %v604_v58 = vsel %vm603_vm1, %v1142_v49, %v602_v54  ;;  %v1421_v25 = vmov 8.0   ;;  %v1136_v27 = vld [vmem:[%s1709_s2] ss:$0 sm:$0xff] }
  0x5c   : > { %v580_v31 = vadd.f32 %v579_v30, %v578_v29  ;;  %v536_v33 = vld.sshfl [vmem:[#allocation1 + $0x20] sm:$0xff pattern:$0x75316420]  ;;  %v537_v34 = vld.sshfl [vmem:[#allocation1 + $0x28] sm:$0xff pattern:$0x75316420]  ;;  %1143 = vrcp.f32 %v1421_v25  ;;  %p1349_p8 = pnand %p1348_p4, %p1579_p7  ;;  %p1354_p11 = por %p1353_p2, %p1352_p10 }
  0x5d   : > { %v588_v39 = vsel %vm557_vm0, %v536_v33, 0.0  ;;  %v589_v40 = vsel %vm557_vm0, %v537_v34, 0.0  ;;  %v731_v33 = vld [vmem:[#allocation10 + $0x18] sm:$0xff]  ;;  %v728_v34 = vld [vmem:[#allocation10] sm:$0xff] }
  0x5e   : > { %566 = vadd.xlane.f32.xlu0 %v565_v26  ;;  %581 = vadd.xlane.f32.xlu2 %v580_v31  ;;  %v533_v35 = vld.sshfl [vmem:[#allocation1 + $0x10] sm:$0xff pattern:$0x75316420]  ;;  %v534_v36 = vld.sshfl [vmem:[#allocation1 + $0x18] sm:$0xff pattern:$0x75316420]  ;;  %v590_v46 = vadd.f32 %v589_v40, %v588_v39  ;;  %p1350_p9 = pneg %p1349_p8 }
  0x5f   : > { %v583_v37 = vsel %vm557_vm0, %v533_v35, 0.0  ;;  %v584_v38 = vsel %vm557_vm0, %v534_v36, 0.0  ;;  %v729_v36 = vld [vmem:[#allocation10 + $0x8] sm:$0xff] }
  0x60   : > { %576 = vadd.xlane.f32.xlu1 %v575_v32  ;;  %v539_v41 = vld.sshfl [vmem:[#allocation1 + $0x30] sm:$0xff pattern:$0x75316420]  ;;  %v540_v42 = vld.sshfl [vmem:[#allocation1 + $0x38] sm:$0xff pattern:$0x75316420]  ;;  %v585_v45 = vadd.f32 %v584_v38, %v583_v37  ;;  %v732_v40 = vpack.c.bf16 %v729_v36, %v728_v34  ;;  %p1355_p12 = pnand %p1354_p11, %p1350_p9 }
  0x61   : > { %v593_v43 = vsel %vm557_vm0, %v539_v41, 0.0  ;;  %v594_v44 = vsel %vm557_vm0, %v540_v42, 0.0  ;;  %v730_v32 = vld [vmem:[#allocation10 + $0x10] sm:$0xff] }
  0x62   : > { %v595_v47 = vadd.f32 %v594_v44, %v593_v43  ;;  %v1144_v26 = vpop.eup %1143  ;;  %v733_v35 = vpack.c.bf16 %v731_v33, %v730_v32  ;;  %v1031_v34 = vld [vmem:[%s1624_s28] sm:$0xff] }
  0x63   : > { %v685_v28 = vmul.f32 8.0, %v1144_v26  ;;  %vm689_vm11 = vweird.f32 %v1144_v26 }
  0x64   : > { %747 = vmatpush.bf16.msra.mxu1 %v733_v35 }
  0x65   : > { %v686_v31 = vsub.f32 1.0, %v685_v28 }
  0x66   : > { %586 = vadd.xlane.f32.xlu2 %v585_v45  ;;  %591 = vadd.xlane.f32.xlu0 %v590_v46 }
  0x67   : > { %v687_v41 = vmul.f32 %v1144_v26, %v686_v31 }
  0x68   : > { %596 = vadd.xlane.f32.xlu1 %v595_v47  ;;  %748 = vmatpush.bf16.msra.mxu1 %v732_v40 }
  0x69   : > { %v688_v47 = vadd.f32 %v1144_v26, %v687_v41 }
  0x6b   : > { %v690_v52 = vsel %vm689_vm11, %v1144_v26, %v688_v47 }
  0xc9   : > { %v562_v55 = vpop.xlane.xlu0 %561 }
  0xca   : > { %v605_v60 = vmul.f32 %v604_v58, %v562_v55 }
  0xcb   : > { %v572_v56 = vpop.xlane.xlu1 %571 }
  0xcc   : > { %v607_v61 = vmul.f32 %v604_v58, %v572_v56  ;;  %v628_v2 = vperm.slane %v605_v60, %v627_v59 }
  0xce   : > { %v630_v5 = vperm.slane %v607_v61, %v627_v59 }
  0xd1   : > { %v567_v62 = vpop.xlane.xlu0 %566  ;;  %v582_v63 = vpop.xlane.xlu2 %581 }
  0xd2   : > { %v606_v0 = vmul.f32 %v604_v58, %v567_v62  ;;  %v609_v8 = vmul.f32 %v604_v58, %v582_v63 }
  0xd3   : > { %v577_v1 = vpop.xlane.xlu1 %576 }
  0xd4   : > { %v629_v3 = vperm.slane %v606_v0, %v627_v59  ;;  %v608_v4 = vmul.f32 %v604_v58, %v577_v1  ;;  %v632_v15 = vperm.slane %v609_v8, %v627_v59 }
  0xd6   : > { %v637_v6 = vsel %vm636_vm2, %v629_v3, %v628_v2  ;;  %v631_v7 = vperm.slane %v608_v4, %v627_v59  ;;  %v704_v3 = vld [vmem:[#allocation7] sm:$0x1] }
  0xd7   : > { %v639_v9 = vsel %vm638_vm3, %v630_v5, %v637_v6 }
  0xd8   : > { %v641_v12 = vsel %vm640_vm4, %v631_v7, %v639_v9  ;;  %v1137_v9 = vld [vmem:[#allocation8] ss:$0 sm:$0xff] }
  0xd9   : > { %v587_v10 = vpop.xlane.xlu2 %586  ;;  %v592_v11 = vpop.xlane.xlu0 %591  ;;  %v643_v20 = vsel %vm642_vm5, %v632_v15, %v641_v12 }
  0xda   : > { %v610_v13 = vmul.f32 %v604_v58, %v587_v10  ;;  %v611_v14 = vmul.f32 %v604_v58, %v592_v11 }
  0xdb   : > { %v597_v16 = vpop.xlane.xlu1 %596 }
  0xdc   : > { %v633_v17 = vperm.slane %v610_v13, %v627_v59  ;;  %v634_v18 = vperm.slane %v611_v14, %v627_v59  ;;  %v612_v19 = vmul.f32 %v604_v58, %v597_v16  ;;  %v1138_v13 = vld [vmem:[%s1713_s6] ss:$0 sm:$0xff] }
  0xde   : > { %v635_v21 = vperm.slane %v612_v19, %v627_v59  ;;  %v645_v22 = vsel %vm644_vm6, %v633_v17, %v643_v20 }
  0xdf   : > { %v647_v23 = vsel %vm646_vm7, %v634_v18, %v645_v22 }
  0xe0   : > { %v649_v24 = vsel %vm648_vm8, %v635_v21, %v647_v23 }
  0xe1   : > { %1016 = vmatmul.msk.f32.vlgmr.msra.gmra.mxu0 %vm650_vm9, %v649_v24 }
 0x15e   : > { %v673_v29 = vpop.f32.mrf.mxu0 }
 0x15f   : > { %v674_v30 = vadd.f32 %v1136_v27, %v673_v29  ;;  %v1032_v29 = vld [vmem:[%s1624_s28 + $0x8] sm:$0xff] }
 0x160   : > { %838 = vmatpush.bf16.msra.mxu2 %v1032_v29 }
 0x161   : > { %v677_v37 = vsel %vm676_vm10, %v674_v30, 0.0  ;;  %v692_v38 = vmul.f32 %v674_v30, %v674_v30 }
 0x162   : > { %v678_v39 = vrot.slane %v677_v37, 4 }
 0x163   : > { %v693_v42 = vsel %vm676_vm10, %v692_v38, 0.0 }
 0x164   : > { %v679_v43 = vadd.f32 %v678_v39, %v677_v37  ;;  %v694_v44 = vrot.slane %v693_v42, 4  ;;  %839 = vmatpush.bf16.msra.mxu2 %v1031_v34 }
 0x166   : > { %v680_v45 = vrot.slane %v679_v43, 2  ;;  %v695_v46 = vadd.f32 %v694_v44, %v693_v42 }
 0x168   : > { %v681_v48 = vadd.f32 %v680_v45, %v679_v43  ;;  %v696_v49 = vrot.slane %v695_v46, 2  ;;  %v774_v45 = vld [vmem:[%s1714_s7] sm:$0x1] }
 0x16a   : > { %v682_v50 = vrot.slane %v681_v48, 1  ;;  %v697_v51 = vadd.f32 %v696_v49, %v695_v46 }
 0x16c   : > { %v683_v53 = vadd.f32 %v682_v50, %v681_v48  ;;  %v698_v54 = vrot.slane %v697_v51, 1 }
 0x16e   : > { %v691_v55 = vmul.f32 %v690_v52, %v683_v53  ;;  %v699_v56 = vadd.f32 %v698_v54, %v697_v51  ;;  %v1139_v51 = vld [vmem:[%s1715_s8] ss:$0 sm:$0xff] }
 0x170   : > { %v700_v57 = vmul.f32 %v699_v56, %v690_v52  ;;  %v701_v58 = vmul.f32 %v691_v55, %v691_v55  ;;  %v717_v7 = vsub.f32 %v674_v30, %v691_v55 }
 0x172   : > { %v702_v59 = vsub.f32 %v700_v57, %v701_v58 }
 0x174   : > { %v703_v60 = vmax.f32 %v702_v59, 0.0 }
 0x176   : > { %v705_v61 = vadd.f32 1e-05, %v703_v60 }
 0x178   : > { %1145 = vrsqrt.f32 %v705_v61  ;;  %vm712_vm13 = vweird.f32 %v705_v61 }
 0x17e   : > { %v1146_v62 = vpop.eup %1145 }
 0x17f   : > { %v707_v63 = vmul.f32 %v1146_v62, %v705_v61  ;;  %vm713_vm12 = vweird.f32 %v1146_v62 }
 0x180   : > { %vm714_vm14 = vmor %vm712_vm13, %vm713_vm12 }
 0x181   : > { %v708_v0 = vmul.f32 %v1146_v62, %v707_v63 }
 0x183   : > { %v709_v1 = vmul.f32 0.5, %v708_v0 }
 0x185   : > { %v710_v2 = vsub.f32 1.5, %v709_v1 }
 0x187   : > { %v711_v4 = vmul.f32 %v1146_v62, %v710_v2  ;;  %v1140_v2 = vld [vmem:[%s496_s25] ss:$0 sm:$0xff] }
 0x189   : > { %v715_v5 = vsel %vm714_vm14, %v1146_v62, %v711_v4 }
 0x18a   : > { %v716_v6 = vmul.f32 %v715_v5, %v704_v3 }
 0x18c   : > { %v719_v8 = vperm.slane %v716_v6, 0 }
 0x18e   : > { %v721_v10 = vmul.f32 %v719_v8, %v717_v7 }
 0x190   : > { %v726_v11 = vadd.f32 %v1137_v9, %v721_v10 }
 0x192   : > { %v727_v12 = vpack.c.bf16 %v726_v11, %v726_v11 }
 0x194   : > { %1017 = vmatmul.msk.bf16.vlgmr.msra.gmra.mxu1 %vm676_vm10, %v727_v12 }
 0x211   : > { %v750_v14 = vpop.f32.mrf.mxu1 }
 0x212   : > { %v751_v15 = vadd.f32 %v1138_v13, %v750_v14 }
 0x214   : > { %v754_v16 = vsel %vm676_vm10, %v751_v15, 0.0  ;;  %v762_v17 = vmul.f32 %v751_v15, %v751_v15 }
 0x215   : > { %v755_v18 = vrot.slane %v754_v16, 4 }
 0x216   : > { %v763_v19 = vsel %vm676_vm10, %v762_v17, 0.0 }
 0x217   : > { %v756_v20 = vadd.f32 %v755_v18, %v754_v16  ;;  %v764_v21 = vrot.slane %v763_v19, 4 }
 0x219   : > { %v757_v22 = vrot.slane %v756_v20, 2  ;;  %v765_v23 = vadd.f32 %v764_v21, %v763_v19  ;;  %v752_v24 = vpop.f32.mrf.mxu1 }
 0x21b   : > { %v758_v25 = vadd.f32 %v757_v22, %v756_v20  ;;  %v766_v26 = vrot.slane %v765_v23, 2 }
 0x21d   : > { %v759_v27 = vrot.slane %v758_v25, 1  ;;  %v767_v28 = vadd.f32 %v766_v26, %v765_v23 }
 0x21f   : > { %v760_v30 = vadd.f32 %v759_v27, %v758_v25  ;;  %v768_v31 = vrot.slane %v767_v28, 1 }
 0x221   : > { %v761_v32 = vmul.f32 %v760_v30, %v690_v52  ;;  %v769_v33 = vadd.f32 %v768_v31, %v767_v28 }
 0x223   : > { %v770_v35 = vmul.f32 %v769_v33, %v690_v52  ;;  %v771_v36 = vmul.f32 %v761_v32, %v761_v32  ;;  %v787_v49 = vsub.f32 %v751_v15, %v761_v32 }
 0x225   : > { %v772_v37 = vsub.f32 %v770_v35, %v771_v36 }
 0x227   : > { %v773_v38 = vmax.f32 %v772_v37, 0.0 }
 0x229   : > { %v775_v39 = vadd.f32 1e-05, %v773_v38 }
 0x22b   : > { %1147 = vrsqrt.f32 %v775_v39  ;;  %vm782_vm0 = vweird.f32 %v775_v39 }
 0x231   : > { %v1148_v40 = vpop.eup %1147 }
 0x232   : > { %v777_v41 = vmul.f32 %v1148_v40, %v775_v39  ;;  %vm783_vm15 = vweird.f32 %v1148_v40 }
 0x233   : > { %vm784_vm1 = vmor %vm782_vm0, %vm783_vm15 }
 0x234   : > { %v778_v42 = vmul.f32 %v1148_v40, %v777_v41 }
 0x236   : > { %v779_v43 = vmul.f32 0.5, %v778_v42 }
 0x238   : > { %v780_v44 = vsub.f32 1.5, %v779_v43 }
 0x23a   : > { %v781_v46 = vmul.f32 %v1148_v40, %v780_v44 }
 0x23c   : > { %v785_v47 = vsel %vm784_vm1, %v1148_v40, %v781_v46 }
 0x23d   : > { %v786_v48 = vmul.f32 %v785_v47, %v774_v45 }
 0x23f   : > { %v789_v50 = vperm.slane %v786_v48, 0 }
 0x241   : > { %v791_v52 = vmul.f32 %v789_v50, %v787_v49 }
 0x243   : > { %v796_v53 = vadd.f32 %v1139_v51, %v791_v52 }
 0x245   : > { %v812_v54 = vpack.c.bf16 %v796_v53, %v796_v53  ;;  %v797_v55 = vmul.f32 %v796_v53, %v796_v53 }
 0x247   : > { %1026 = vmatmul.msk.bf16.vlgmr.msra.gmra.mxu2 %vm676_vm10, %v812_v54  ;;  %v798_v56 = vsel %vm676_vm10, %v797_v55, 0.0 }
 0x248   : > { %799 = vadd.xlane.f32.xlu2 %v798_v56 }
 0x2bb   : > { %v800_v57 = vpop.xlane.xlu2 %799 }
 0x2bc   : > { %v801_v58 = vmax.f32 %v800_v57, 1e-24 }
 0x2be   : > { %1149 = vrsqrt.f32 %v801_v58  ;;  %vm808_vm3 = vweird.f32 %v801_v58 }
 0x2c4   : > { %v1150_v59 = vpop.eup %1149 }
 0x2c5   : > { %v803_v60 = vmul.f32 %v1150_v59, %v801_v58  ;;  %vm809_vm2 = vweird.f32 %v1150_v59 }
 0x2c6   : > { %vm810_vm4 = vmor %vm808_vm3, %vm809_vm2 }
 0x2c7   : > { %v804_v61 = vmul.f32 %v1150_v59, %v803_v60 }
 0x2c9   : > { %v805_v62 = vmul.f32 0.5, %v804_v61 }
 0x2ca   : > { %v841_v63 = vpop.f32.mrf.mxu2 }
 0x2cb   : > { %v806_v0 = vsub.f32 1.5, %v805_v62 }
 0x2cd   : > { %v807_v1 = vmul.f32 %v1150_v59, %v806_v0 }
 0x2cf   : > { %v811_v3 = vsel %vm810_vm4, %v1150_v59, %v807_v1 }
 0x2d0   : > { %v845_v4 = vmul.f32 %v841_v63, %v811_v3 }
 0x2d2   : > { %v850_v5 = vmul.f32 %v1140_v2, %v845_v4  ;;  %v843_v6 = vpop.f32.mrf.mxu2 }
 0x2d4   : > { %851 = vst [vmem:[%s493_s4] sm:$0xff] %v850_v5 }
 0x2d5   : > { %1358 = shalt.err (!%p1355_p12)
}
 0x2d6   : > { %1055 = dma.vmem_to_hbm [thread:$0]  (%p1579_p7), %s866_s12, 128, %s868_s13, %s853_s21  }
 0x2d7 PF: > { %s879_s3 = sand.u32 1, %s1397_s17   ;;  %p1740_p13 = scmp.ge.s32.totalorder %s1409_s20, 2 }
 0x2d8   : > { %s880_s5 = scalar_lea.sflag [#allocation4], %s879_s3 }
 0x2d9   : > { %p1078_p0 = pnand %p1740_p13, %p1517_p6 }
 0x2db   : > { %p1079_p3 = pneg %p1078_p0 }
 0x2dd   : > { %1392 = dma.done.wait (%p1079_p3), %s880_s5, 128  }
 0x2de   : > { %1394 = vsyncadd (%p1079_p3), %s880_s5, 4294967168  ;;  %p27_p5 = scmp.ge.s32.totalorder %s1561_s29, 4   ;;  %s1741_s17 = smov %s1401_s18 }
 0x2df   : > { %s1742_s18 = smov %s1405_s19  ;;  %s1743_s19 = smov %s1575_s27 }
 0x2e0   : > { %s1744_s20 = smov %s1561_s29  ;;  %29 = sbr.rel (!%p27_p5) target bundleno = 14 (0xe), region = 136 }
 0x2e5   :  { %886 = vsyncpa [#allocation3], 1 }
 0x2e6   :  { %888 = vsyncpa [#allocation3 + $0x1], 1 }
 0x2e7   :  { %889 = vsyncpa [#allocation6], 1 }
 0x2e8   :  { %890 = vsyncpa [#allocation9], 1 }
 0x2e9   :  { %891 = vsyncpa [#allocation12], 1 }
 0x2ea   :  { %893 = vsyncpa [#allocation12 + $0x1], 1 }
 0x2eb   :  { %894 = vsyncpa [#allocation4], 1 }
 0x2ec   :  { %896 = vsyncpa [#allocation4 + $0x1], 1 }

</bundles_post_ra>
